<compile_context>
chip_gen: v6e
topology: v6e:2x2x1
jax: 0.10.0
libtpu: 0.0.40
codegen_flags: <defaults>
</compile_context>

<pallas_src>
import jax
import jax.numpy as jnp
from jax.experimental import pallas as pl
from jax.experimental.pallas import tpu as pltpu

_LANE = 128
_SUBLANE = 8
# Below this feature width, the batch-major (B, D) layout wastes the 128-wide
# lane axis (2/128 lanes at D=2), so we use the transposed (D, B) layout.
_BATCH_MAJOR_MIN_D = 128
# Batches above this always get >= 2 grid steps (v7x has 2 TensorCores per
# chip; also restores DMA/compute/writeback overlap on v5e/v6e).
_LARGE_B = 4096


def _cdiv(a, b):
    return -(-a // b)


def _round_up(n, m):
    return ((n + m - 1) // m) * m


def _vmem_params():
    """(block budget bytes, scoped vmem_limit_bytes), TPU-generation aware.

    v5e/v6e have 128 MiB physical VMEM so larger double-buffered blocks are
    free headroom; v7x has only 64 MiB physical so stay conservative there.
    """
    phys = None
    try:
        phys = getattr(pltpu.get_tpu_info(), "vmem_capacity_bytes", None)
    except Exception:  # query unavailable -> assume the tightest chip (v7x)
        phys = None
    if phys is None or phys <= (64 << 20):      # v7x-like or unknown
        return 12 << 20, 32 << 20
    return 24 << 20, 64 << 20                   # v5e / v6e


# --------------------------------------------------------------------------- #
# Kernels
# --------------------------------------------------------------------------- #
def _quad_kernel_lane_major(x_ref, xs_ref, o_ref):
    # x_ref : (D, tile_b) block -- feature dim on sublanes, batch on the
    #         128-wide lane axis (full lane utilization even at D=2).
    # xs_ref: (D, tile_b), or (D, 1) when x_star is a broadcast goal point.
    # Upcast so bf16 inputs are subtracted/accumulated in f32 (v5e has no bf16
    # VPU path; in-kernel cast keeps HBM traffic at bf16 width).
    x = x_ref[...].astype(jnp.float32)
    xs = xs_ref[...].astype(jnp.float32)
    d = x - xs
    # Cheap cross-sublane reduce over the (small) feature axis -> lane-dense
    # (1, tile_b) row; stores are unmasked vst.  VPU/XLU work hides under the
    # input DMA in this memory-bound kernel (kept off the MXU on purpose).
    o_ref[...] = jnp.sum(d * d, axis=0, keepdims=True)


def _quad_kernel_batch_major(x_ref, xs_ref, o_ref):
    # Fallback for wide features (D >= 128): (tile_b, D) block, per-row reduce.
    x = x_ref[...].astype(jnp.float32)
    xs = xs_ref[...].astype(jnp.float32)
    d = x - xs
    o_ref[...] = jnp.sum(d * d, axis=1, keepdims=True)


# --------------------------------------------------------------------------- #
# Tile selection (padded-VMEM accounting, generation-aware budget)
# --------------------------------------------------------------------------- #
def _choose_tile_lanes(B, D, itemsize, n_stream, budget):
    """Lane tile (multiple of 128, or B itself) for the (D, B) layout."""
    pack = max(1, 4 // itemsize)                    # sub-32-bit dtypes pack sublanes
    padded_rows = _round_up(D, _SUBLANE * pack)     # VMEM sublane padding of D
    per_lane = (n_stream * 2 * padded_rows * itemsize   # streamed inputs, 2 buffers
                + 2 * _SUBLANE * 4)                      # (1, tile) f32 out pads to 8 rows
    cap = max(_LANE, (budget // per_lane) // _LANE * _LANE)
    b_pad = _round_up(B, _LANE)
    if B <= _LARGE_B:
        # Small problem: one full-extent block if it fits (block dim == full
        # array dim is always legal), else the biggest VMEM-legal tile.
        return B if b_pad <= cap else cap
    # Large batch: keep >= 2 grid steps (two v7x TCs, pipeline overlap) but
    # keep blocks as fat as VMEM allows (byte-dense steps).
    two_steps = _round_up(_cdiv(b_pad, 2), _LANE)
    return max(_LANE, min(cap, two_steps))


def _choose_tile_rows(B, D, itemsize, n_stream, budget):
    """Row tile (multiple of 8, or B itself) for the batch-major (B, D) layout."""
    padded_cols = _round_up(D, _LANE)               # VMEM lane padding of D
    per_row = (n_stream * 2 * padded_cols * itemsize
               + 2 * _LANE * 4)                     # (tile, 1) f32 out lane-pads to 128
    cap = max(_SUBLANE, (budget // per_row) // _SUBLANE * _SUBLANE)
    b_pad = _round_up(B, _SUBLANE)
    if B <= _LARGE_B:
        return B if b_pad <= cap else cap
    two_steps = _round_up(_cdiv(b_pad, 2), _SUBLANE)
    return max(_SUBLANE, min(cap, two_steps))


# --------------------------------------------------------------------------- #
# Wrappers
# --------------------------------------------------------------------------- #
def _potential_lane_major(x, x_star, broadcast, tile_b):
    B, D = x.shape
    itemsize = jnp.dtype(x.dtype).itemsize
    n_stream = 1 if broadcast else 2
    budget, vmem_limit = _vmem_params()
    if tile_b is None:
        tile_b = _choose_tile_lanes(B, D, itemsize, n_stream, budget)
    else:
        tile_b = B if tile_b >= B else max(_LANE, _round_up(tile_b, _LANE))
        tile_b = min(tile_b, B)
    grid = (pl.cdiv(B, tile_b),)   # ragged tail block is masked by Pallas

    # Feature-on-sublane / batch-on-lane presentation.  The wrapper transpose
    # touches only B*D elements (tiny at the module's D=2) and buys lane-dense
    # DMA, full vreg utilization and an unmasked lane-dense output store.
    x_t = x.T                                               # (D, B)
    if broadcast:
        xs_t = jnp.reshape(x_star, (D, 1))                  # constant goal column
        xs_spec = pl.BlockSpec((D, 1), lambda i: (0, 0))
    else:
        xs_t = x_star.T
        xs_spec = pl.BlockSpec((D, tile_b), lambda i: (0, i))

    out = pl.pallas_call(
        _quad_kernel_lane_major,
        out_shape=jax.ShapeDtypeStruct((1, B), jnp.float32),
        grid_spec=pltpu.PrefetchScalarGridSpec(
            num_scalar_prefetch=0,
            grid=grid,
            in_specs=[pl.BlockSpec((D, tile_b), lambda i: (0, i)), xs_spec],
            out_specs=pl.BlockSpec((1, tile_b), lambda i: (0, i)),
        ),
        compiler_params=pltpu.CompilerParams(
            dimension_semantics=("parallel",),
            vmem_limit_bytes=vmem_limit,
        ),
    )(x_t, xs_t)
    return out[0, :]


def _potential_batch_major(x, x_star, broadcast, tile_b):
    B, D = x.shape
    itemsize = jnp.dtype(x.dtype).itemsize
    n_stream = 1 if broadcast else 2
    budget, vmem_limit = _vmem_params()
    if tile_b is None:
        tile_b = _choose_tile_rows(B, D, itemsize, n_stream, budget)
    else:
        tile_b = B if tile_b >= B else max(_SUBLANE, _round_up(tile_b, _SUBLANE))
        tile_b = min(tile_b, B)
    grid = (pl.cdiv(B, tile_b),)

    if broadcast:
        xs2 = jnp.reshape(x_star, (1, D))
        xs_spec = pl.BlockSpec((1, D), lambda i: (0, 0))
    else:
        xs2 = x_star
        xs_spec = pl.BlockSpec((tile_b, D), lambda i: (i, 0))

    out = pl.pallas_call(
        _quad_kernel_batch_major,
        out_shape=jax.ShapeDtypeStruct((B, 1), jnp.float32),
        grid_spec=pltpu.PrefetchScalarGridSpec(
            num_scalar_prefetch=0,
            grid=grid,
            in_specs=[pl.BlockSpec((tile_b, D), lambda i: (i, 0)), xs_spec],
            out_specs=pl.BlockSpec((tile_b, 1), lambda i: (i, 0)),
        ),
        compiler_params=pltpu.CompilerParams(
            dimension_semantics=("parallel",),
            vmem_limit_bytes=vmem_limit,
        ),
    )(x, xs2)
    return out[:, 0]


def quadratic_potential(x, x_star, *, tile_b=None):
    """Pallas equivalent of QuadraticPotentialFunction()(x, x_star), feature=None.

    x: (B, D) float32 or bfloat16.
    x_star: (B, D), or a broadcast goal point (D,) / (1, D).
    Returns (B,) float32.
    """
    x = jnp.asarray(x)
    x_star = jnp.asarray(x_star)
    assert x.ndim == 2, "x must be (B, D)"
    B, D = x.shape
    assert D >= 1

    if x_star.ndim == 1:
        assert x_star.shape == (D,)
        broadcast = True
    elif x_star.shape == (1, D) and B != 1:
        broadcast = True
    else:
        assert x_star.shape == (B, D)
        broadcast = False

    if D < _BATCH_MAJOR_MIN_D:
        return _potential_lane_major(x, x_star, broadcast, tile_b)
    return _potential_batch_major(x, x_star, broadcast, tile_b)


if __name__ == "__main__":
    key = jax.random.PRNGKey(0)
    k1, k2, k3, k4, k5, k6, k7, k8 = jax.random.split(key, 8)

    # (a) Module's production shape: dim=2 state vectors, small batch, x_star is
    #     the other agent's batched position (as in DuoNormalizingFlowDS.forward).
    B0, D0 = 8, 2
    x0 = jax.random.normal(k1, (B0, D0), dtype=jnp.float32)
    xs0 = jax.random.normal(k2, (B0, D0), dtype=jnp.float32)
    out0 = jax.block_until_ready(quadratic_potential(x0, xs0))
    ref0 = jnp.sum((x0 - xs0) ** 2, axis=1)
    assert out0.shape == (B0,)
    assert jnp.allclose(out0, ref0, rtol=1e-5, atol=1e-5)

    # (b) Broadcast goal point, ragged batch large enough to force a >=2-step
    #     "parallel" grid (dual v7x TCs) and a masked tail block.
    B1, D1 = 4100, 2
    x1 = jax.random.normal(k3, (B1, D1), dtype=jnp.float32)
    xs1 = jax.random.normal(k4, (D1,), dtype=jnp.float32)
    out1 = jax.block_until_ready(quadratic_potential(x1, xs1))
    ref1 = jnp.sum((x1 - xs1[None, :]) ** 2, axis=1)
    assert out1.shape == (B1,)
    assert jnp.allclose(out1, ref1, rtol=1e-5, atol=1e-4)

    # (c) Wide-feature fallback path (batch-major layout).
    B2, D2 = 264, 128
    x2 = jax.random.normal(k5, (B2, D2), dtype=jnp.float32)
    xs2 = jax.random.normal(k6, (B2, D2), dtype=jnp.float32)
    out2 = jax.block_until_ready(quadratic_potential(x2, xs2))
    ref2 = jnp.sum((x2 - xs2) ** 2, axis=1)
    assert out2.shape == (B2,)
    assert jnp.allclose(out2, ref2, rtol=1e-5, atol=1e-3)

    # (d) bf16 inputs: in-kernel f32 upcast keeps HBM traffic at bf16 width.
    B3, D3 = 8, 2
    x3 = jax.random.normal(k7, (B3, D3), dtype=jnp.bfloat16)
    xs3 = jax.random.normal(k8, (B3, D3), dtype=jnp.bfloat16)
    out3 = jax.block_until_ready(quadratic_potential(x3, xs3))
    ref3 = jnp.sum((x3.astype(jnp.float32) - xs3.astype(jnp.float32)) ** 2, axis=1)
    assert out3.shape == (B3,)
    assert jnp.allclose(out3, ref3, rtol=1e-5, atol=1e-5)

    print("KERNEL_OK")
</pallas_src>

<mosaic_0001>
module attributes {stable_mosaic.version = 11 : i64} {
  func.func @_quad_kernel_lane_major(%arg0: i32, %arg1: memref<2x8xf32, #tpu.memory_space<vmem>>, %arg2: memref<2x8xf32, #tpu.memory_space<vmem>>, %arg3: memref<1x8xf32, #tpu.memory_space<vmem>>) attributes {dimension_semantics = [#tpu.dimension_semantics<parallel>], iteration_bounds = array<i64: 1>, scalar_prefetch = 0 : i64, scratch_operands = 0 : i64, tpu.core_type = #tpu.core_type<tc>, window_params = [{transform_indices = @transform_0, window_bounds = array<i64: 2, 8>}, {transform_indices = @transform_1, window_bounds = array<i64: 2, 8>}, {transform_indices = @transform_2, window_bounds = array<i64: 1, 8>}]} {
    %c0 = arith.constant 0 : index
    %c0_0 = arith.constant 0 : index
    %0 = vector.load %arg1[%c0, %c0_0] : memref<2x8xf32, #tpu.memory_space<vmem>>, vector<2x8xf32>
    %c0_1 = arith.constant 0 : index
    %c0_2 = arith.constant 0 : index
    %1 = vector.load %arg2[%c0_1, %c0_2] : memref<2x8xf32, #tpu.memory_space<vmem>>, vector<2x8xf32>
    %2 = arith.subf %0, %1 : vector<2x8xf32>
    %3 = arith.mulf %2, %2 : vector<2x8xf32>
    %cst = arith.constant dense<0.000000e+00> : vector<8xf32>
    %4 = vector.multi_reduction <add>, %3, %cst [0] : vector<2x8xf32> to vector<8xf32>
    %5 = vector.shape_cast %4 : vector<8xf32> to vector<1x8xf32>
    %c0_3 = arith.constant 0 : index
    %c0_4 = arith.constant 0 : index
    %6 = vector.load %arg3[%c0_3, %c0_4] : memref<1x8xf32, #tpu.memory_space<vmem>>, vector<1x8xf32>
    tpu.vector_store %arg3[%c0_3, %c0_4], %5 {strides = array<i32>} : memref<1x8xf32, #tpu.memory_space<vmem>>, vector<1x8xf32>,
    return
  }
  func.func @transform_0(%arg0: i32) -> (i32, i32) {
    %c0_i32 = arith.constant 0 : i32
    %c0_i32_0 = arith.constant 0 : i32
    return %c0_i32, %arg0 : i32, i32
  }
  func.func @transform_1(%arg0: i32) -> (i32, i32) {
    %c0_i32 = arith.constant 0 : i32
    %c0_i32_0 = arith.constant 0 : i32
    return %c0_i32, %arg0 : i32, i32
  }
  func.func @transform_2(%arg0: i32) -> (i32, i32) {
    %c0_i32 = arith.constant 0 : i32
    %c0_i32_0 = arith.constant 0 : i32
    return %c0_i32, %arg0 : i32, i32
  }
}

</mosaic_0001>

<bundles_post_ra>
// kernel: tpu_custom_call.1
= control target key start
LH: loop header
LB: loop body
LE: loop exit
PB: predicated region body
PF: predicated region fallthrough
CT: control target
= control target key end

     0   :  { %7 = vsyncpa [#allocation3], 0  ;;  %s162_s0 = inlined_call_operand.hbm [shape: f32[2,8], index: 0, kind: input, shape index: {}]   ;;  %s163_s1 = inlined_call_operand.hbm [shape: f32[2,8], index: 1, kind: input, shape index: {}]   ;;  %s164_s2 = inlined_call_operand.hbm [shape: f32[1,8], index: 2, kind: output, shape index: {}]  }
   0x1   :  { %8 = vsyncpa [#allocation6], 0 }
   0x2   :  { %9 = vsyncpa [#allocation4], 0  ;;  %s135_s9 = smov [#allocation2]   ;;  %s136_s11 = smov [#allocation5]  }
   0x3   :  { %s16_s10 = sshll.u32 %s135_s9, 4  ;;  %s26_s12 = sshll.u32 %s136_s11, 4  ;;  %s17_s10 = int_to_ptr.vmem [resolvable:$true] %s16_s10  ;;  %s27_s12 = int_to_ptr.vmem [resolvable:$true] %s26_s12 }
   0x4   :  { %s77_s13 = scalar_lea.vmem %s17_s10, 32  ;;  %p82_p1 = scmp.lt.s32.totalorder %s17_s10, %s17_s10 }
   0x5   :  { %p78_p0 = scmp.ne.s32.totalorder %s17_s10, %s77_s13  ;;  %p83_p2 = scmp.lt.s32.totalorder %s77_s13, %s77_s13 }
   0x7   :  { %p84_p3 = por %p83_p2, %p82_p1 }
   0x9   :  { %p85_p4 = pnand %p84_p3, %p78_p0 }
   0xb   :  { %88 = shalt.err (!%p85_p4)
}
   0xc   :  { %19 = dma.hbm_to_vmem [thread:$0]  %s162_s0, 32, %s17_s10, [#allocation3]  }
   0xd   :  { %s97_s16 = scalar_lea.vmem %s27_s12, 32  ;;  %p102_p6 = scmp.lt.s32.totalorder %s27_s12, %s27_s12 }
   0xe   :  { %p98_p5 = scmp.ne.s32.totalorder %s27_s12, %s97_s16  ;;  %p103_p7 = scmp.lt.s32.totalorder %s97_s16, %s97_s16 }
  0x10   :  { %p104_p8 = por %p103_p7, %p102_p6 }
  0x12   :  { %p105_p9 = pnand %p104_p8, %p98_p5 }
  0x14   :  { %108 = shalt.err (!%p105_p9)
}
  0x15   :  { %29 = dma.hbm_to_vmem [thread:$0]  %s163_s1, 32, %s27_s12, [#allocation6]  }
  0x16   :  { %129 = dma.done.wait [#allocation3], 32  }
  0x17   :  { %130 = vsyncadd [#allocation3], 4294967264 }
  0x18   :  { %131 = dma.done.wait [#allocation6], 32  }
  0x19   :  { %132 = vsyncadd [#allocation6], 4294967264  ;;  %v36_v0 = vld [vmem:[#allocation2] sm:$0x3]  ;;  %v37_v1 = vld [vmem:[#allocation5] sm:$0x3] }
  0x1a   :  { %v38_v2 = vsub.f32 %v36_v0, %v37_v1  ;;  %vm40_vm0 = vcmask 58368   ;;  %s137_s0 = smov [#allocation7]   ;;  %vm48_vm1 = vcmask 57344  }
  0x1b   :  { %s56_s19 = sshll.u32 %s137_s0, 4  ;;  %s57_s19 = int_to_ptr.vmem [resolvable:$true] %s56_s19 }
  0x1c   :  { %v39_v3 = vmul.f32 %v38_v2, %v38_v2  ;;  %s109_s1 = scalar_lea.vmem %s57_s19, 16  ;;  %s113_s20 = scalar_lea.vmem %s57_s19, 32 }
  0x1d   :  { %p110_p10 = scmp.ne.s32.totalorder %s57_s19, %s109_s1  ;;  %p114_p11 = scmp.lt.s32.totalorder %s57_s19, %s57_s19 }
  0x1e   :  { %v41_v4 = vsel %vm40_vm0, %v39_v3, 0.0  ;;  %p115_p12 = scmp.lt.s32.totalorder %s113_s20, %s109_s1 }
  0x1f   :  { %v42_v5 = vrot.slane %v41_v4, 4 }
  0x20   :  { %p116_p13 = por %p115_p12, %p114_p11 }
  0x21   :  { %v43_v6 = vadd.f32 %v42_v5, %v41_v4 }
  0x22   :  { %p117_p0 = pnand %p116_p13, %p110_p10 }
  0x23   :  { %v44_v7 = vrot.slane %v43_v6, 2 }
  0x25   :  { %v45_v8 = vadd.f32 %v44_v7, %v43_v6 }
  0x27   :  { %v46_v9 = vrot.slane %v45_v8, 1 }
  0x29   :  { %v47_v10 = vadd.f32 %v46_v9, %v45_v8 }
  0x2b   :  { %49 = vst.msk [vmem:[#allocation7] sm:$0x1] %vm48_vm1, %v47_v10 }
  0x2c   :  { %120 = shalt.err (!%p117_p0)
}
  0x2d   :  { %59 = dma.vmem_to_hbm [thread:$0]  %s57_s19, 16, %s164_s2, [#allocation4]  }
  0x2e   :  { %133 = dma.done.wait [#allocation4], 16  }
  0x2f   :  { %134 = vsyncadd [#allocation4], 4294967280 }
  0x30   :  { %63 = vsyncpa [#allocation3], 1 }
  0x31   :  { %64 = vsyncpa [#allocation6], 1 }
  0x32   :  { %65 = vsyncpa [#allocation4], 1 }

</bundles_post_ra>
